<compile_context>
chip_gen: v6e
topology: v6e:2x2x1
jax: 0.10.0
libtpu: 0.0.40
codegen_flags: <defaults>
</compile_context>

<pallas_src>
import functools

import jax
import jax.numpy as jnp
from jax.experimental import pallas as pl
from jax.experimental.pallas import tpu as pltpu

# MLP layer widths (from nn.Sequential in Net.__init__)
DIMS = [352, 176, 88, 44, 22, 11, 1]


def _round_up(n, m):
    return ((n + m - 1) // m) * m


_EW_BF16_CACHE = None


def _elementwise_bf16_ok():
    """bf16 VPU/EUP path exists on v6e/v7x; v5e and earlier are f32-only."""
    global _EW_BF16_CACHE
    if _EW_BF16_CACHE is None:
        try:
            kind = jax.devices()[0].device_kind.lower()
            _EW_BF16_CACHE = not any(v in kind for v in ("v2", "v3", "v4", "v5"))
        except Exception:  # unknown backend -> conservative f32 elementwise
            _EW_BF16_CACHE = False
    return _EW_BF16_CACHE


def _mlp_kernel(x_ref,
                w0_ref, b0_ref,
                w1_ref, b1_ref,
                w2_ref, b2_ref,
                w3_ref, b3_ref,
                w4_ref, b4_ref,
                w5_ref, b5_ref,
                o_ref, *, ew_bf16):
    """Fused forward pass for one (TB, 352) batch tile.

    Layers 0..4: MXU matmul ([in,out] weights) with f32 accumulation, f32 bias
    add; tanh in bf16 on bf16-capable chips (ew_bf16=True) else f32.
    Layer 5 (11 -> 1): VPU multiply + lane reduce against the (1, 11) f32 row.
    """
    h = x_ref[...]
    for w_ref, b_ref in ((w0_ref, b0_ref), (w1_ref, b1_ref), (w2_ref, b2_ref),
                         (w3_ref, b3_ref), (w4_ref, b4_ref)):
        z = jnp.dot(h, w_ref[...], preferred_element_type=jnp.float32) + b_ref[...]
        if ew_bf16:
            h = jnp.tanh(z.astype(jnp.bfloat16))      # bf16 EUP; already matmul dtype
        else:
            h = jnp.tanh(z).astype(w_ref.dtype)       # f32 EUP; cast for next matmul

    # Final Linear(11 -> 1): elementwise multiply + reduce, no 1/128-lane MXU pass.
    y = jnp.sum(h.astype(jnp.float32) * w5_ref[...], axis=-1, keepdims=True) + b5_ref[...]
    o_ref[...] = y.astype(o_ref.dtype)


def prepare_params(params, *, use_bf16=True):
    """One-time packing of (W_t [in,out], b [1,out]) params into kernel dtypes."""
    cdt = jnp.bfloat16 if use_bf16 else jnp.float32
    n = len(params)
    prepped = []
    for li, (w_t, b) in enumerate(params):
        if li < n - 1:
            w_in = w_t.astype(cdt)                                   # [in, out] for MXU
        else:
            w_in = w_t.reshape(1, DIMS[-2]).astype(jnp.float32)      # (1, 11) row for VPU
        prepped.append((w_in, b.astype(jnp.float32)))
    return prepped


def net_forward(x, prepped_params, *, tb_cap=2048, n_target_tiles=4):
    """x: [B, 352].  prepped_params: output of prepare_params()."""
    B, F = x.shape
    assert F == DIMS[0]
    cdt = prepped_params[0][0].dtype
    use_bf16 = cdt == jnp.bfloat16
    ew_bf16 = use_bf16 and _elementwise_bf16_ok()

    # Batch tile: multiple of 16 (bf16 pack native), overshoot < one tile, and
    # >= n_target_tiles grid steps for large batches (v7x megacore sharding).
    TB = min(tb_cap, _round_up(max(pl.cdiv(B, n_target_tiles), 16), 16))
    Bp = _round_up(B, TB)
    n_tiles = Bp // TB

    xk = x.astype(cdt)
    if Bp != B:
        xk = jnp.pad(xk, ((0, Bp - B), (0, 0)))

    flat_inputs = [xk]
    in_specs = [pl.BlockSpec((TB, DIMS[0]), lambda i: (i, 0))]
    for w_in, b_in in prepped_params:
        flat_inputs += [w_in, b_in]
        # Constant block index -> fetched once, VMEM-resident across all grid steps.
        in_specs += [pl.BlockSpec(w_in.shape, lambda i: (0, 0)),
                     pl.BlockSpec(b_in.shape, lambda i: (0, 0))]

    # Advisory cost hint for XLA scheduling around the custom call.
    flops = 2 * Bp * sum(DIMS[i] * DIMS[i + 1] for i in range(len(DIMS) - 1))
    transcendentals = Bp * sum(DIMS[1:-1])
    param_bytes = sum(int(w.size) * jnp.dtype(w.dtype).itemsize + int(b.size) * 4
                      for w, b in prepped_params)
    bytes_accessed = (Bp * DIMS[0] * jnp.dtype(cdt).itemsize
                      + Bp * DIMS[-1] * 4 + param_bytes)

    out = pl.pallas_call(
        functools.partial(_mlp_kernel, ew_bf16=ew_bf16),
        out_shape=jax.ShapeDtypeStruct((Bp, DIMS[-1]), jnp.float32),
        grid=(n_tiles,),
        in_specs=in_specs,
        out_specs=pl.BlockSpec((TB, DIMS[-1]), lambda i: (i, 0)),
        compiler_params=pltpu.CompilerParams(
            dimension_semantics=("parallel",),   # shard batch tiles across v7x's 2 TCs
            vmem_limit_bytes=16 << 20,           # weights ~0.33 MiB + <3 MiB x tiles
        ),
        cost_estimate=pl.CostEstimate(
            flops=flops,
            transcendentals=transcendentals,
            bytes_accessed=bytes_accessed,
        ),
    )(*flat_inputs)

    return out[:B]


def init_params(key):
    """Deterministic init mimicking nn.Linear default uniform(-1/sqrt(in), 1/sqrt(in)).

    Returns list of (W_transposed [in,out], b [1,out])."""
    params = []
    for i in range(len(DIMS) - 1):
        fan_in, fan_out = DIMS[i], DIMS[i + 1]
        key, kw, kb = jax.random.split(key, 3)
        bound = 1.0 / (fan_in ** 0.5)
        w_t = jax.random.uniform(kw, (fan_in, fan_out), jnp.float32, -bound, bound)
        b = jax.random.uniform(kb, (1, fan_out), jnp.float32, -bound, bound)
        params.append((w_t, b))
    return params


def reference_forward(x, params):
    """Pure f32 reference matching the PyTorch module."""
    h = x
    for i, (w_t, b) in enumerate(params):
        h = h @ w_t + b
        if i < len(params) - 1:
            h = jnp.tanh(h)
    return h


if __name__ == "__main__":
    key = jax.random.PRNGKey(0)
    key, kx1, kx2 = jax.random.split(key, 3)
    params = init_params(key)

    # Pre-pack parameters once (per review), for both dtype paths.
    params_f32 = prepare_params(params, use_bf16=False)
    params_bf16 = prepare_params(params, use_bf16=True)

    # 1) Tiny batch, exact f32 path (TB collapses to 16, single grid step).
    B1 = 8
    x1 = jax.random.normal(kx1, (B1, DIMS[0]), jnp.float32)
    out1 = jax.block_until_ready(net_forward(x1, params_f32))
    ref1 = reference_forward(x1, params)
    assert out1.shape == (B1, 1)
    assert jnp.allclose(out1, ref1, atol=1e-5, rtol=1e-5), "f32 path mismatch vs reference"

    # 2) Larger (still small) batch: bf16 MXU (+ bf16 tanh on v6e/v7x) path,
    #    multi-step grid (TB=160 -> 4 tiles, pad 600 -> 640).
    B2 = 600
    x2 = jax.random.normal(kx2, (B2, DIMS[0]), jnp.float32)
    out2 = jax.block_until_ready(net_forward(x2, params_bf16))
    ref2 = reference_forward(x2, params)
    assert out2.shape == (B2, 1)
    assert jnp.allclose(out2, ref2, atol=2e-2, rtol=5e-2), "bf16 path mismatch vs reference"

    print("KERNEL_OK")
</pallas_src>

<mosaic_0001>
module attributes {stable_mosaic.version = 11 : i64} {
  func.func @_mlp_kernel(%arg0: i32, %arg1: memref<16x352xf32, #tpu.memory_space<vmem>>, %arg2: memref<352x176xf32, #tpu.memory_space<vmem>>, %arg3: memref<1x176xf32, #tpu.memory_space<vmem>>, %arg4: memref<176x88xf32, #tpu.memory_space<vmem>>, %arg5: memref<1x88xf32, #tpu.memory_space<vmem>>, %arg6: memref<88x44xf32, #tpu.memory_space<vmem>>, %arg7: memref<1x44xf32, #tpu.memory_space<vmem>>, %arg8: memref<44x22xf32, #tpu.memory_space<vmem>>, %arg9: memref<1x22xf32, #tpu.memory_space<vmem>>, %arg10: memref<22x11xf32, #tpu.memory_space<vmem>>, %arg11: memref<1x11xf32, #tpu.memory_space<vmem>>, %arg12: memref<1x11xf32, #tpu.memory_space<vmem>>, %arg13: memref<1x1xf32, #tpu.memory_space<vmem>>, %arg14: memref<16x1xf32, #tpu.memory_space<vmem>>) attributes {dimension_semantics = [#tpu.dimension_semantics<parallel>], iteration_bounds = array<i64: 1>, scalar_prefetch = 0 : i64, scratch_operands = 0 : i64, tpu.core_type = #tpu.core_type<tc>, window_params = [{transform_indices = @transform_0, window_bounds = array<i64: 16, 352>}, {pipeline_mode = #tpu.pipeline_mode<synchronous>, transform_indices = @transform_1, window_bounds = array<i64: 352, 176>}, {pipeline_mode = #tpu.pipeline_mode<synchronous>, transform_indices = @transform_2, window_bounds = array<i64: 1, 176>}, {pipeline_mode = #tpu.pipeline_mode<synchronous>, transform_indices = @transform_3, window_bounds = array<i64: 176, 88>}, {pipeline_mode = #tpu.pipeline_mode<synchronous>, transform_indices = @transform_4, window_bounds = array<i64: 1, 88>}, {pipeline_mode = #tpu.pipeline_mode<synchronous>, transform_indices = @transform_5, window_bounds = array<i64: 88, 44>}, {pipeline_mode = #tpu.pipeline_mode<synchronous>, transform_indices = @transform_6, window_bounds = array<i64: 1, 44>}, {pipeline_mode = #tpu.pipeline_mode<synchronous>, transform_indices = @transform_7, window_bounds = array<i64: 44, 22>}, {pipeline_mode = #tpu.pipeline_mode<synchronous>, transform_indices = @transform_8, window_bounds = array<i64: 1, 22>}, {pipeline_mode = #tpu.pipeline_mode<synchronous>, transform_indices = @transform_9, window_bounds = array<i64: 22, 11>}, {pipeline_mode = #tpu.pipeline_mode<synchronous>, transform_indices = @transform_10, window_bounds = array<i64: 1, 11>}, {pipeline_mode = #tpu.pipeline_mode<synchronous>, transform_indices = @transform_11, window_bounds = array<i64: 1, 11>}, {pipeline_mode = #tpu.pipeline_mode<synchronous>, transform_indices = @transform_12, window_bounds = array<i64: 1, 1>}, {transform_indices = @transform_13, window_bounds = array<i64: 16, 1>}]} {
    %c0 = arith.constant 0 : index
    %c0_0 = arith.constant 0 : index
    %0 = vector.load %arg1[%c0, %c0_0] : memref<16x352xf32, #tpu.memory_space<vmem>>, vector<16x352xf32>
    %c0_1 = arith.constant 0 : index
    %c0_2 = arith.constant 0 : index
    %1 = vector.load %arg2[%c0_1, %c0_2] : memref<352x176xf32, #tpu.memory_space<vmem>>, vector<352x176xf32>
    %cst = arith.constant dense<0.000000e+00> : vector<16x176xf32>
    %2 = tpu.matmul %0, %1, %cst {dimension_numbers = #tpu.dot_dimension_numbers<[1], [0], [0], [1], [0, 0, 1, 1], [], []>} : vector<16x352xf32>, vector<352x176xf32>, vector<16x176xf32> -> vector<16x176xf32>
    %c0_3 = arith.constant 0 : index
    %c0_4 = arith.constant 0 : index
    %3 = vector.load %arg3[%c0_3, %c0_4] : memref<1x176xf32, #tpu.memory_space<vmem>>, vector<1x176xf32>
    %4 = vector.broadcast %3 : vector<1x176xf32> to vector<16x176xf32>
    %5 = arith.addf %2, %4 : vector<16x176xf32>
    %6 = math.tanh %5 : vector<16x176xf32>
    %c0_5 = arith.constant 0 : index
    %c0_6 = arith.constant 0 : index
    %7 = vector.load %arg4[%c0_5, %c0_6] : memref<176x88xf32, #tpu.memory_space<vmem>>, vector<176x88xf32>
    %cst_7 = arith.constant dense<0.000000e+00> : vector<16x88xf32>
    %8 = tpu.matmul %6, %7, %cst_7 {dimension_numbers = #tpu.dot_dimension_numbers<[1], [0], [0], [1], [0, 0, 1, 1], [], []>} : vector<16x176xf32>, vector<176x88xf32>, vector<16x88xf32> -> vector<16x88xf32>
    %c0_8 = arith.constant 0 : index
    %c0_9 = arith.constant 0 : index
    %9 = vector.load %arg5[%c0_8, %c0_9] : memref<1x88xf32, #tpu.memory_space<vmem>>, vector<1x88xf32>
    %10 = vector.broadcast %9 : vector<1x88xf32> to vector<16x88xf32>
    %11 = arith.addf %8, %10 : vector<16x88xf32>
    %12 = math.tanh %11 : vector<16x88xf32>
    %c0_10 = arith.constant 0 : index
    %c0_11 = arith.constant 0 : index
    %13 = vector.load %arg6[%c0_10, %c0_11] : memref<88x44xf32, #tpu.memory_space<vmem>>, vector<88x44xf32>
    %cst_12 = arith.constant dense<0.000000e+00> : vector<16x44xf32>
    %14 = tpu.matmul %12, %13, %cst_12 {dimension_numbers = #tpu.dot_dimension_numbers<[1], [0], [0], [1], [0, 0, 1, 1], [], []>} : vector<16x88xf32>, vector<88x44xf32>, vector<16x44xf32> -> vector<16x44xf32>
    %c0_13 = arith.constant 0 : index
    %c0_14 = arith.constant 0 : index
    %15 = vector.load %arg7[%c0_13, %c0_14] : memref<1x44xf32, #tpu.memory_space<vmem>>, vector<1x44xf32>
    %16 = vector.broadcast %15 : vector<1x44xf32> to vector<16x44xf32>
    %17 = arith.addf %14, %16 : vector<16x44xf32>
    %18 = math.tanh %17 : vector<16x44xf32>
    %c0_15 = arith.constant 0 : index
    %c0_16 = arith.constant 0 : index
    %19 = vector.load %arg8[%c0_15, %c0_16] : memref<44x22xf32, #tpu.memory_space<vmem>>, vector<44x22xf32>
    %cst_17 = arith.constant dense<0.000000e+00> : vector<16x22xf32>
    %20 = tpu.matmul %18, %19, %cst_17 {dimension_numbers = #tpu.dot_dimension_numbers<[1], [0], [0], [1], [0, 0, 1, 1], [], []>} : vector<16x44xf32>, vector<44x22xf32>, vector<16x22xf32> -> vector<16x22xf32>
    %c0_18 = arith.constant 0 : index
    %c0_19 = arith.constant 0 : index
    %21 = vector.load %arg9[%c0_18, %c0_19] : memref<1x22xf32, #tpu.memory_space<vmem>>, vector<1x22xf32>
    %22 = vector.broadcast %21 : vector<1x22xf32> to vector<16x22xf32>
    %23 = arith.addf %20, %22 : vector<16x22xf32>
    %24 = math.tanh %23 : vector<16x22xf32>
    %c0_20 = arith.constant 0 : index
    %c0_21 = arith.constant 0 : index
    %25 = vector.load %arg10[%c0_20, %c0_21] : memref<22x11xf32, #tpu.memory_space<vmem>>, vector<22x11xf32>
    %cst_22 = arith.constant dense<0.000000e+00> : vector<16x11xf32>
    %26 = tpu.matmul %24, %25, %cst_22 {dimension_numbers = #tpu.dot_dimension_numbers<[1], [0], [0], [1], [0, 0, 1, 1], [], []>} : vector<16x22xf32>, vector<22x11xf32>, vector<16x11xf32> -> vector<16x11xf32>
    %c0_23 = arith.constant 0 : index
    %c0_24 = arith.constant 0 : index
    %27 = vector.load %arg11[%c0_23, %c0_24] : memref<1x11xf32, #tpu.memory_space<vmem>>, vector<1x11xf32>
    %28 = vector.broadcast %27 : vector<1x11xf32> to vector<16x11xf32>
    %29 = arith.addf %26, %28 : vector<16x11xf32>
    %30 = math.tanh %29 : vector<16x11xf32>
    %c0_25 = arith.constant 0 : index
    %c0_26 = arith.constant 0 : index
    %31 = vector.load %arg12[%c0_25, %c0_26] : memref<1x11xf32, #tpu.memory_space<vmem>>, vector<1x11xf32>
    %32 = vector.broadcast %31 : vector<1x11xf32> to vector<16x11xf32>
    %33 = arith.mulf %30, %32 : vector<16x11xf32>
    %cst_27 = arith.constant dense<0.000000e+00> : vector<16xf32>
    %34 = vector.multi_reduction <add>, %33, %cst_27 [1] : vector<16x11xf32> to vector<16xf32>
    %35 = vector.shape_cast %34 : vector<16xf32> to vector<16x1xf32>
    %c0_28 = arith.constant 0 : index
    %c0_29 = arith.constant 0 : index
    %36 = vector.load %arg13[%c0_28, %c0_29] : memref<1x1xf32, #tpu.memory_space<vmem>>, vector<1x1xf32>
    %37 = vector.broadcast %36 : vector<1x1xf32> to vector<16x1xf32>
    %38 = arith.addf %35, %37 : vector<16x1xf32>
    %c0_30 = arith.constant 0 : index
    %c0_31 = arith.constant 0 : index
    %39 = vector.load %arg14[%c0_30, %c0_31] : memref<16x1xf32, #tpu.memory_space<vmem>>, vector<16x1xf32>
    tpu.vector_store %arg14[%c0_30, %c0_31], %38 {strides = array<i32>} : memref<16x1xf32, #tpu.memory_space<vmem>>, vector<16x1xf32>,
    return
  }
  func.func @transform_0(%arg0: i32) -> (i32, i32) {
    %c0_i32 = arith.constant 0 : i32
    %c0_i32_0 = arith.constant 0 : i32
    return %arg0, %c0_i32 : i32, i32
  }
  func.func @transform_1(%arg0: i32) -> (i32, i32) {
    %c0_i32 = arith.constant 0 : i32
    %c0_i32_0 = arith.constant 0 : i32
    %c0_i32_1 = arith.constant 0 : i32
    return %c0_i32, %c0_i32_0 : i32, i32
  }
  func.func @transform_2(%arg0: i32) -> (i32, i32) {
    %c0_i32 = arith.constant 0 : i32
    %c0_i32_0 = arith.constant 0 : i32
    %c0_i32_1 = arith.constant 0 : i32
    return %c0_i32, %c0_i32_0 : i32, i32
  }
  func.func @transform_3(%arg0: i32) -> (i32, i32) {
    %c0_i32 = arith.constant 0 : i32
    %c0_i32_0 = arith.constant 0 : i32
    %c0_i32_1 = arith.constant 0 : i32
    return %c0_i32, %c0_i32_0 : i32, i32
  }
  func.func @transform_4(%arg0: i32) -> (i32, i32) {
    %c0_i32 = arith.constant 0 : i32
    %c0_i32_0 = arith.constant 0 : i32
    %c0_i32_1 = arith.constant 0 : i32
    return %c0_i32, %c0_i32_0 : i32, i32
  }
  func.func @transform_5(%arg0: i32) -> (i32, i32) {
    %c0_i32 = arith.constant 0 : i32
    %c0_i32_0 = arith.constant 0 : i32
    %c0_i32_1 = arith.constant 0 : i32
    return %c0_i32, %c0_i32_0 : i32, i32
  }
  func.func @transform_6(%arg0: i32) -> (i32, i32) {
    %c0_i32 = arith.constant 0 : i32
    %c0_i32_0 = arith.constant 0 : i32
    %c0_i32_1 = arith.constant 0 : i32
    return %c0_i32, %c0_i32_0 : i32, i32
  }
  func.func @transform_7(%arg0: i32) -> (i32, i32) {
    %c0_i32 = arith.constant 0 : i32
    %c0_i32_0 = arith.constant 0 : i32
    %c0_i32_1 = arith.constant 0 : i32
    return %c0_i32, %c0_i32_0 : i32, i32
  }
  func.func @transform_8(%arg0: i32) -> (i32, i32) {
    %c0_i32 = arith.constant 0 : i32
    %c0_i32_0 = arith.constant 0 : i32
    %c0_i32_1 = arith.constant 0 : i32
    return %c0_i32, %c0_i32_0 : i32, i32
  }
  func.func @transform_9(%arg0: i32) -> (i32, i32) {
    %c0_i32 = arith.constant 0 : i32
    %c0_i32_0 = arith.constant 0 : i32
    %c0_i32_1 = arith.constant 0 : i32
    return %c0_i32, %c0_i32_0 : i32, i32
  }
  func.func @transform_10(%arg0: i32) -> (i32, i32) {
    %c0_i32 = arith.constant 0 : i32
    %c0_i32_0 = arith.constant 0 : i32
    %c0_i32_1 = arith.constant 0 : i32
    return %c0_i32, %c0_i32_0 : i32, i32
  }
  func.func @transform_11(%arg0: i32) -> (i32, i32) {
    %c0_i32 = arith.constant 0 : i32
    %c0_i32_0 = arith.constant 0 : i32
    %c0_i32_1 = arith.constant 0 : i32
    return %c0_i32, %c0_i32_0 : i32, i32
  }
  func.func @transform_12(%arg0: i32) -> (i32, i32) {
    %c0_i32 = arith.constant 0 : i32
    %c0_i32_0 = arith.constant 0 : i32
    %c0_i32_1 = arith.constant 0 : i32
    return %c0_i32, %c0_i32_0 : i32, i32
  }
  func.func @transform_13(%arg0: i32) -> (i32, i32) {
    %c0_i32 = arith.constant 0 : i32
    %c0_i32_0 = arith.constant 0 : i32
    return %arg0, %c0_i32 : i32, i32
  }
}

</mosaic_0001>

<bundles_post_ra>
// kernel: tpu_custom_call.1
= control target key start
LH: loop header
LB: loop body
LE: loop exit
PB: predicated region body
PF: predicated region fallthrough
CT: control target
= control target key end

     0   :  { %v881_v3 = vmov 0.0   ;;  %vm152_vm0 = vcmask 785408   ;;  %vm346_vm1 = vcmask 392192   ;;  %vm448_vm2 = vcmask 719872   ;;  %s1413_s1 = inlined_call_operand.vmem [shape: f32[352,176], index: 1, kind: input, shape index: {}]   ;;  %s1414_s0 = inlined_call_operand.vmem [shape: f32[16,352], index: 0, kind: input, shape index: {}]   ;;  %s1415_s3 = inlined_call_operand.vmem [shape: f32[176,88], index: 3, kind: input, shape index: {}]   ;;  %s1416_s5 = inlined_call_operand.vmem [shape: f32[88,44], index: 5, kind: input, shape index: {}]   ;;  %s1417_s2 = inlined_call_operand.vmem [shape: f32[1,176], index: 2, kind: input, shape index: {}]   ;;  %s1418_s4 = inlined_call_operand.vmem [shape: f32[1,88], index: 4, kind: input, shape index: {}]   ;;  %s1419_s7 = inlined_call_operand.vmem [shape: f32[44,22], index: 7, kind: input, shape index: {}]   ;;  %s1420_s6 = inlined_call_operand.vmem [shape: f32[1,44], index: 6, kind: input, shape index: {}]   ;;  %s1421_s9 = inlined_call_operand.vmem [shape: f32[22,11], index: 9, kind: input, shape index: {}]   ;;  %s1422_s8 = inlined_call_operand.vmem [shape: f32[1,22], index: 8, kind: input, shape index: {}]   ;;  %s1423_s12 = inlined_call_operand.<no memory space> [shape: f32[1,1], index: 12, kind: input, shape index: {}]   ;;  %s1424_s10 = inlined_call_operand.vmem [shape: f32[1,11], index: 10, kind: input, shape index: {}]   ;;  %s1425_s11 = inlined_call_operand.vmem [shape: f32[1,11], index: 11, kind: input, shape index: {}]   ;;  %s1426_s13 = inlined_call_operand.vmem [shape: f32[16,1], index: 13, kind: output, shape index: {}]  }
   0x1   :  { %v83_v0 = vld [vmem:[%s1413_s1 + $0xf8] sm:$0xff]  ;;  %v82_v1 = vld [vmem:[%s1413_s1 + $0xf0] sm:$0xff]  ;;  %v81_v2 = vld [vmem:[%s1413_s1 + $0xe8] sm:$0xff]  ;;  %300 = vmatprep.mubr.f32.mxu1 %v881_v3  ;;  %vm552_vm3 = vcmask 1043456   ;;  %vm545_vm4 = vcmask 359424   ;;  %vm650_vm5 = vcmask 1045504  }
   0x2   :  { %159 = vmatprep.subr.mxu0 %v83_v0  ;;  %v80_v4 = vld [vmem:[%s1413_s1 + $0xe0] sm:$0xff]  ;;  %v79_v5 = vld [vmem:[%s1413_s1 + $0xd8] sm:$0xff]  ;;  %v78_v6 = vld [vmem:[%s1413_s1 + $0xd0] sm:$0xff]  ;;  %vm643_vm6 = vcmask 179200   ;;  %vm740_vm7 = vcmask 89088   ;;  %vm756_vm8 = vcmask 7168  }
   0x3   :  { %160 = vmatpush1.msra.mxu0 %v82_v1  ;;  %v77_v7 = vld [vmem:[%s1413_s1 + $0xc8] sm:$0xff]  ;;  %v76_v8 = vld [vmem:[%s1413_s1 + $0xc0] sm:$0xff]  ;;  %v75_v9 = vld [vmem:[%s1413_s1 + $0xb8] sm:$0xff] }
   0x4   :  { %161 = vmatprep.subr.mxu0 %v81_v2  ;;  %v74_v10 = vld [vmem:[%s1413_s1 + $0xb0] sm:$0xff]  ;;  %v73_v11 = vld [vmem:[%s1413_s1 + $0xa8] sm:$0xff]  ;;  %v72_v12 = vld [vmem:[%s1413_s1 + $0xa0] sm:$0xff] }
   0x5   :  { %162 = vmatpush1.msra.mxu0 %v80_v4  ;;  %v71_v13 = vld [vmem:[%s1413_s1 + $0x98] sm:$0xff]  ;;  %v70_v14 = vld [vmem:[%s1413_s1 + $0x90] sm:$0xff]  ;;  %v69_v15 = vld [vmem:[%s1413_s1 + $0x88] sm:$0xff] }
   0x6   :  { %163 = vmatprep.subr.mxu0 %v79_v5  ;;  %v68_v16 = vld [vmem:[%s1413_s1 + $0x80] sm:$0xff]  ;;  %v139_v17 = vld [vmem:[%s1413_s1 + $0x2b8] sm:$0xff]  ;;  %v138_v19 = vld [vmem:[%s1413_s1 + $0x2b0] sm:$0xff] }
   0x7   :  { %164 = vmatpush1.msra.mxu0 %v78_v6  ;;  %v67_v18 = vld [vmem:[%s1413_s1 + $0x78] sm:$0xff]  ;;  %244 = vmatprep.subr.mxu1 %v139_v17  ;;  %v66_v20 = vld [vmem:[%s1413_s1 + $0x70] sm:$0xff]  ;;  %v137_v21 = vld [vmem:[%s1413_s1 + $0x2a8] sm:$0xff] }
   0x8   :  { %165 = vmatprep.subr.mxu0 %v77_v7  ;;  %245 = vmatpush1.msra.mxu1 %v138_v19  ;;  %v136_v22 = vld [vmem:[%s1413_s1 + $0x2a0] sm:$0xff]  ;;  %v65_v23 = vld [vmem:[%s1413_s1 + $0x68] sm:$0xff]  ;;  %v135_v24 = vld [vmem:[%s1413_s1 + $0x298] sm:$0xff] }
   0x9   :  { %166 = vmatpush1.msra.mxu0 %v76_v8  ;;  %246 = vmatprep.subr.mxu1 %v137_v21  ;;  %v64_v25 = vld [vmem:[%s1413_s1 + $0x60] sm:$0xff]  ;;  %v134_v26 = vld [vmem:[%s1413_s1 + $0x290] sm:$0xff]  ;;  %v133_v27 = vld [vmem:[%s1413_s1 + $0x288] sm:$0xff] }
   0xa   :  { %167 = vmatprep.subr.mxu0 %v75_v9  ;;  %247 = vmatpush1.msra.mxu1 %v136_v22  ;;  %v63_v28 = vld [vmem:[%s1413_s1 + $0x58] sm:$0xff]  ;;  %v132_v29 = vld [vmem:[%s1413_s1 + $0x280] sm:$0xff]  ;;  %v62_v30 = vld [vmem:[%s1413_s1 + $0x50] sm:$0xff] }
   0xb   :  { %168 = vmatpush1.msra.mxu0 %v74_v10  ;;  %248 = vmatprep.subr.mxu1 %v135_v24  ;;  %v131_v31 = vld [vmem:[%s1413_s1 + $0x278] sm:$0xff]  ;;  %v61_v32 = vld [vmem:[%s1413_s1 + $0x48] sm:$0xff]  ;;  %v130_v33 = vld [vmem:[%s1413_s1 + $0x270] sm:$0xff] }
   0xc   :  { %169 = vmatprep.subr.mxu0 %v73_v11  ;;  %249 = vmatpush1.msra.mxu1 %v134_v26  ;;  %v60_v34 = vld [vmem:[%s1413_s1 + $0x40] sm:$0xff]  ;;  %v129_v35 = vld [vmem:[%s1413_s1 + $0x268] sm:$0xff]  ;;  %v59_v36 = vld [vmem:[%s1413_s1 + $0x38] sm:$0xff] }
   0xd   :  { %170 = vmatpush1.msra.mxu0 %v72_v12  ;;  %250 = vmatprep.subr.mxu1 %v133_v27  ;;  %v128_v37 = vld [vmem:[%s1413_s1 + $0x260] sm:$0xff]  ;;  %v58_v38 = vld [vmem:[%s1413_s1 + $0x30] sm:$0xff]  ;;  %v127_v39 = vld [vmem:[%s1413_s1 + $0x258] sm:$0xff] }
   0xe   :  { %171 = vmatprep.subr.mxu0 %v71_v13  ;;  %251 = vmatpush1.msra.mxu1 %v132_v29  ;;  %v57_v40 = vld [vmem:[%s1413_s1 + $0x28] sm:$0xff]  ;;  %v126_v41 = vld [vmem:[%s1413_s1 + $0x250] sm:$0xff]  ;;  %v56_v42 = vld [vmem:[%s1413_s1 + $0x20] sm:$0xff] }
   0xf   :  { %172 = vmatpush1.msra.mxu0 %v70_v14  ;;  %252 = vmatprep.subr.mxu1 %v131_v31  ;;  %v125_v43 = vld [vmem:[%s1413_s1 + $0x248] sm:$0xff]  ;;  %v55_v44 = vld [vmem:[%s1413_s1 + $0x18] sm:$0xff]  ;;  %v124_v45 = vld [vmem:[%s1413_s1 + $0x240] sm:$0xff] }
  0x10   :  { %173 = vmatprep.subr.mxu0 %v69_v15  ;;  %253 = vmatpush1.msra.mxu1 %v130_v33  ;;  %v54_v46 = vld [vmem:[%s1413_s1 + $0x10] sm:$0xff]  ;;  %v123_v47 = vld [vmem:[%s1413_s1 + $0x238] sm:$0xff]  ;;  %v53_v48 = vld [vmem:[%s1413_s1 + $0x8] sm:$0xff] }
  0x11   :  { %174 = vmatpush1.msra.mxu0 %v68_v16  ;;  %254 = vmatprep.subr.mxu1 %v129_v35  ;;  %v122_v49 = vld [vmem:[%s1413_s1 + $0x230] sm:$0xff]  ;;  %v52_v50 = vld [vmem:[%s1413_s1] sm:$0xff]  ;;  %v121_v51 = vld [vmem:[%s1413_s1 + $0x228] sm:$0xff] }
  0x12   :  { %175 = vmatprep.subr.mxu0 %v67_v18  ;;  %255 = vmatpush1.msra.mxu1 %v128_v37  ;;  %v115_v52 = vld [vmem:[%s1413_s1 + $0x1f8] sm:$0xff]  ;;  %v120_v53 = vld [vmem:[%s1413_s1 + $0x220] sm:$0xff]  ;;  %v114_v54 = vld [vmem:[%s1413_s1 + $0x1f0] sm:$0xff] }
  0x13   :  { %176 = vmatpush1.msra.mxu0 %v66_v20  ;;  %256 = vmatprep.subr.mxu1 %v127_v39  ;;  %v119_v55 = vld [vmem:[%s1413_s1 + $0x218] sm:$0xff]  ;;  %v113_v56 = vld [vmem:[%s1413_s1 + $0x1e8] sm:$0xff]  ;;  %v118_v57 = vld [vmem:[%s1413_s1 + $0x210] sm:$0xff] }
  0x14   :  { %177 = vmatprep.subr.mxu0 %v65_v23  ;;  %257 = vmatpush1.msra.mxu1 %v126_v41  ;;  %v112_v58 = vld [vmem:[%s1413_s1 + $0x1e0] sm:$0xff]  ;;  %v117_v59 = vld [vmem:[%s1413_s1 + $0x208] sm:$0xff]  ;;  %v111_v60 = vld [vmem:[%s1413_s1 + $0x1d8] sm:$0xff] }
  0x15   :  { %178 = vmatpush1.msra.mxu0 %v64_v25  ;;  %258 = vmatprep.subr.mxu1 %v125_v43  ;;  %v47_v61 = vld [vmem:[%s1414_s0 + $0x8] sm:$0xff]  ;;  %v110_v62 = vld [vmem:[%s1413_s1 + $0x1d0] sm:$0xff]  ;;  %v116_v63 = vld [vmem:[%s1413_s1 + $0x200] sm:$0xff] }
  0x16   :  { %179 = vmatprep.subr.mxu0 %v63_v28  ;;  %259 = vmatpush1.msra.mxu1 %v124_v45  ;;  %v109_v0 = vld [vmem:[%s1413_s1 + $0x1c8] sm:$0xff]  ;;  %v48_v1 = vld [vmem:[%s1414_s0 + $0x10] sm:$0xff]  ;;  %v108_v2 = vld [vmem:[%s1413_s1 + $0x1c0] sm:$0xff] }
  0x17   :  { %180 = vmatpush1.msra.mxu0 %v62_v30  ;;  %260 = vmatprep.subr.mxu1 %v123_v47  ;;  %v107_v4 = vld [vmem:[%s1413_s1 + $0x1b8] sm:$0xff]  ;;  %v106_v5 = vld [vmem:[%s1413_s1 + $0x1b0] sm:$0xff]  ;;  %v105_v7 = vld [vmem:[%s1413_s1 + $0x1a8] sm:$0xff] }
  0x18   :  { %181 = vmatprep.subr.mxu0 %v61_v32  ;;  %261 = vmatpush1.msra.mxu1 %v122_v49  ;;  %v332_v6 = vld [vmem:[%s1415_s3 + $0x78] sm:$0xff]  ;;  %v51_v8 = vld [vmem:[%s1414_s0 + $0x28] sm:$0xff]  ;;  %v104_v9 = vld [vmem:[%s1413_s1 + $0x1a0] sm:$0xff] }
  0x19   :  { %182 = vmatpush1.msra.mxu0 %v60_v34  ;;  %262 = vmatprep.subr.mxu1 %v121_v51  ;;  %v103_v10 = vld [vmem:[%s1413_s1 + $0x198] sm:$0xff]  ;;  %v331_v11 = vld [vmem:[%s1415_s3 + $0x70] sm:$0xff]  ;;  %v101_v13 = vld [vmem:[%s1413_s1 + $0x188] sm:$0xff] }
  0x1a   :  { %183 = vmatprep.subr.mxu0 %v59_v36  ;;  %263 = vmatpush1.msra.mxu1 %v120_v53  ;;  %v102_v12 = vld [vmem:[%s1413_s1 + $0x190] sm:$0xff]  ;;  %v330_v14 = vld [vmem:[%s1415_s3 + $0x68] sm:$0xff]  ;;  %v100_v15 = vld [vmem:[%s1413_s1 + $0x180] sm:$0xff] }
  0x1b   :  { %184 = vmatpush1.msra.mxu0 %v58_v38  ;;  %264 = vmatprep.subr.mxu1 %v119_v55  ;;  %v99_v16 = vld [vmem:[%s1413_s1 + $0x178] sm:$0xff]  ;;  %v329_v17 = vld [vmem:[%s1415_s3 + $0x60] sm:$0xff]  ;;  %v98_v18 = vld [vmem:[%s1413_s1 + $0x170] sm:$0xff]  ;;  %v142_v55 = vlaneseq }
  0x1c   :  { %185 = vmatprep.subr.mxu0 %v57_v40  ;;  %265 = vmatpush1.msra.mxu1 %v118_v57  ;;  %v97_v19 = vld [vmem:[%s1413_s1 + $0x168] sm:$0xff]  ;;  %v328_v20 = vld [vmem:[%s1415_s3 + $0x58] sm:$0xff]  ;;  %v96_v21 = vld [vmem:[%s1413_s1 + $0x160] sm:$0xff] }
  0x1d   :  { %186 = vmatpush1.msra.mxu0 %v56_v42  ;;  %266 = vmatprep.subr.mxu1 %v117_v59  ;;  %v95_v22 = vld [vmem:[%s1413_s1 + $0x158] sm:$0xff]  ;;  %v327_v23 = vld [vmem:[%s1415_s3 + $0x50] sm:$0xff]  ;;  %v93_v25 = vld [vmem:[%s1413_s1 + $0x148] sm:$0xff] }
  0x1e   :  { %187 = vmatprep.subr.mxu0 %v55_v44  ;;  %223 = vmatprep.mubr.f32.mxu0 %v47_v61  ;;  %v94_v24 = vld [vmem:[%s1413_s1 + $0x150] sm:$0xff]  ;;  %v326_v26 = vld [vmem:[%s1415_s3 + $0x48] sm:$0xff]  ;;  %v92_v27 = vld [vmem:[%s1413_s1 + $0x140] sm:$0xff] }
  0x1f   :  { %188 = vmatpush1.msra.mxu0 %v54_v46  ;;  %267 = vmatpush1.msra.mxu1 %v116_v63  ;;  %v91_v28 = vld [vmem:[%s1413_s1 + $0x138] sm:$0xff]  ;;  %v325_v29 = vld [vmem:[%s1415_s3 + $0x40] sm:$0xff]  ;;  %v90_v30 = vld [vmem:[%s1413_s1 + $0x130] sm:$0xff] }
  0x20   :  { %189 = vmatprep.subr.mxu0 %v53_v48  ;;  %763 = vmatmul.mubr.msk.f32.vlgmr.msra.gmra.mxu1 %vm152_vm0, %v48_v1  ;;  %v89_v31 = vld [vmem:[%s1413_s1 + $0x128] sm:$0xff]  ;;  %v324_v32 = vld [vmem:[%s1415_s3 + $0x38] sm:$0xff]  ;;  %v88_v33 = vld [vmem:[%s1413_s1 + $0x120] sm:$0xff] }
  0x21   :  { %190 = vmatpush1.msra.mxu0 %v52_v50  ;;  %306 = vmatprep.mubr.f32.mxu1 %v881_v3  ;;  %v87_v34 = vld [vmem:[%s1413_s1 + $0x118] sm:$0xff]  ;;  %v323_v35 = vld [vmem:[%s1415_s3 + $0x30] sm:$0xff]  ;;  %v85_v37 = vld [vmem:[%s1413_s1 + $0x108] sm:$0xff] }
  0x22   :  { %191 = vmatprep.subr.mxu0 %v115_v52  ;;  %353 = vmatprep.subr.mxu1 %v881_v3  ;;  %v86_v36 = vld [vmem:[%s1413_s1 + $0x110] sm:$0xff]  ;;  %v322_v38 = vld [vmem:[%s1415_s3 + $0x28] sm:$0xff]  ;;  %v84_v39 = vld [vmem:[%s1413_s1 + $0x100] sm:$0xff] }
  0x23   :  { %192 = vmatpush2.msra.mxu0 %v114_v54  ;;  %354 = vmatpush1.msra.mxu1 %v332_v6  ;;  %v46_v40 = vld [vmem:[%s1414_s0] sm:$0xff]  ;;  %v49_v42 = vld [vmem:[%s1414_s0 + $0x18] sm:$0xff]  ;;  %v319_v45 = vld [vmem:[%s1415_s3 + $0x10] sm:$0xff] }
  0x24   :  { %193 = vmatprep.subr.mxu0 %v113_v56  ;;  %764 = vmatmul.mubr.msk.f32.gmra.mxu1 %vm152_vm0, %v51_v8  ;;  %v50_v41 = vld [vmem:[%s1414_s0 + $0x20] sm:$0xff]  ;;  %v320_v44 = vld [vmem:[%s1415_s3 + $0x18] sm:$0xff]  ;;  %v318_v46 = vld [vmem:[%s1415_s3 + $0x8] sm:$0xff]  ;;  %v143_v56 = vshrl.u32 %v142_v55, 7 }
  0x25   :  { %194 = vmatpush2.msra.mxu0 %v112_v58  ;;  %355 = vmatprep.subr.mxu1 %v881_v3  ;;  %v321_v43 = vld [vmem:[%s1415_s3 + $0x20] sm:$0xff]  ;;  %v338_v48 = vld [vmem:[%s1415_s3 + $0xa8] sm:$0xff]  ;;  %v336_v50 = vld [vmem:[%s1415_s3 + $0x98] sm:$0xff] }
  0x26   :  { %195 = vmatprep.subr.mxu0 %v111_v60  ;;  %356 = vmatpush1.msra.mxu1 %v331_v11  ;;  %v317_v47 = vld [vmem:[%s1415_s3] sm:$0xff]  ;;  %v335_v51 = vld [vmem:[%s1415_s3 + $0x90] sm:$0xff]  ;;  %v334_v52 = vld [vmem:[%s1415_s3 + $0x88] sm:$0xff]  ;;  %v144_v57 = vsub.s32 0, %v143_v56  ;;  %v148_v59 = vsub.s32 1, %v143_v56 }
  0x27   :  { %196 = vmatpush2.msra.mxu0 %v110_v62  ;;  %357 = vmatprep.subr.mxu1 %v881_v3  ;;  %v337_v49 = vld [vmem:[%s1415_s3 + $0xa0] sm:$0xff]  ;;  %v440_v54 = vld [vmem:[%s1416_s5 + $0x50] sm:$0xff] }
  0x28   :  { %197 = vmatprep.subr.mxu0 %v109_v0  ;;  %358 = vmatpush1.msra.mxu1 %v330_v14  ;;  %v333_v53 = vld [vmem:[%s1415_s3 + $0x80] sm:$0xff] }
  0x29   :  { %198 = vmatpush2.msra.mxu0 %v108_v2  ;;  %359 = vmatprep.subr.mxu1 %v881_v3  ;;  %v140_v58 = vld [vmem:[%s1417_s2] sm:$0x3] }
  0x2a   :  { %199 = vmatprep.subr.mxu0 %v107_v4  ;;  %360 = vmatpush1.msra.mxu1 %v329_v17  ;;  %v145_v61 = vrot.slane %v140_v58, %v144_v57  ;;  %v149_v62 = vrot.slane %v140_v58, %v148_v59 }
  0x2b   :  { %200 = vmatpush2.msra.mxu0 %v106_v5  ;;  %361 = vmatprep.subr.mxu1 %v881_v3 }
  0x2c   :  { %201 = vmatprep.subr.mxu0 %v105_v7  ;;  %362 = vmatpush1.msra.mxu1 %v328_v20  ;;  %v437_v20 = vld [vmem:[%s1416_s5 + $0x38] sm:$0xff] }
  0x2d   :  { %202 = vmatpush2.msra.mxu0 %v104_v9  ;;  %363 = vmatprep.subr.mxu1 %v881_v3 }
  0x2e   :  { %203 = vmatprep.subr.mxu0 %v103_v10  ;;  %364 = vmatpush1.msra.mxu1 %v327_v23  ;;  %v434_v23 = vld [vmem:[%s1416_s5 + $0x20] sm:$0xff] }
  0x2f   :  { %204 = vmatpush2.msra.mxu0 %v102_v12  ;;  %365 = vmatprep.subr.mxu1 %v881_v3 }
  0x30   :  { %205 = vmatprep.subr.mxu0 %v101_v13  ;;  %366 = vmatpush1.msra.mxu1 %v326_v26  ;;  %v431_v26 = vld [vmem:[%s1416_s5 + $0x8] sm:$0xff] }
  0x31   :  { %206 = vmatpush2.msra.mxu0 %v100_v15  ;;  %367 = vmatprep.subr.mxu1 %v881_v3 }
  0x32   :  { %207 = vmatprep.subr.mxu0 %v99_v16  ;;  %368 = vmatpush1.msra.mxu1 %v325_v29 }
  0x33   :  { %208 = vmatpush2.msra.mxu0 %v98_v18  ;;  %369 = vmatprep.subr.mxu1 %v881_v3  ;;  %v439_v18 = vld [vmem:[%s1416_s5 + $0x48] sm:$0xff] }
  0x34   :  { %209 = vmatprep.subr.mxu0 %v97_v19  ;;  %370 = vmatpush1.msra.mxu1 %v324_v32  ;;  %v438_v19 = vld [vmem:[%s1416_s5 + $0x40] sm:$0xff] }
  0x35   :  { %210 = vmatpush2.msra.mxu0 %v96_v21  ;;  %371 = vmatprep.subr.mxu1 %v881_v3  ;;  %v436_v21 = vld [vmem:[%s1416_s5 + $0x30] sm:$0xff] }
  0x36   :  { %211 = vmatprep.subr.mxu0 %v95_v22  ;;  %372 = vmatpush1.msra.mxu1 %v323_v35  ;;  %v435_v22 = vld [vmem:[%s1416_s5 + $0x28] sm:$0xff] }
  0x37   :  { %212 = vmatpush2.msra.mxu0 %v94_v24  ;;  %373 = vmatprep.subr.mxu1 %v881_v3  ;;  %v433_v24 = vld [vmem:[%s1416_s5 + $0x18] sm:$0xff] }
  0x38   :  { %213 = vmatprep.subr.mxu0 %v93_v25  ;;  %374 = vmatpush1.msra.mxu1 %v322_v38  ;;  %v432_v25 = vld [vmem:[%s1416_s5 + $0x10] sm:$0xff]  ;;  %v536_v38 = vld [vmem:[%s1419_s7 + $0x20] sm:$0xff] }
  0x39   :  { %214 = vmatpush2.msra.mxu0 %v92_v27  ;;  %375 = vmatprep.subr.mxu1 %v881_v3  ;;  %v430_v27 = vld [vmem:[%s1416_s5] sm:$0xff] }
  0x3a   :  { %215 = vmatprep.subr.mxu0 %v91_v28  ;;  %376 = vmatpush1.msra.mxu1 %v321_v43  ;;  %v765_v28 = vld [vmem:[%s1418_s4] ss:$0 sm:$0xff] }
  0x3b   :  { %216 = vmatpush2.msra.mxu0 %v90_v30  ;;  %377 = vmatprep.subr.mxu1 %v881_v3  ;;  %v768_v43 = vld [vmem:[%s1420_s6] ss:$0 sm:$0xff] }
  0x3c   :  { %217 = vmatprep.subr.mxu0 %v89_v31  ;;  %378 = vmatpush1.msra.mxu1 %v320_v44 }
  0x3d   :  { %218 = vmatpush2.msra.mxu0 %v88_v33  ;;  %379 = vmatprep.subr.mxu1 %v881_v3 }
  0x3e   :  { %219 = vmatprep.subr.mxu0 %v87_v34  ;;  %380 = vmatpush1.msra.mxu1 %v319_v45 }
  0x3f   :  { %220 = vmatpush2.msra.mxu0 %v86_v36  ;;  %381 = vmatprep.subr.mxu1 %v881_v3 }
  0x40   :  { %221 = vmatprep.subr.mxu0 %v85_v37  ;;  %382 = vmatpush1.msra.mxu1 %v318_v46  ;;  %v537_v37 = vld [vmem:[%s1419_s7 + $0x28] sm:$0xf] }
  0x41   :  { %222 = vmatpush2.msra.mxu0 %v84_v39  ;;  %383 = vmatprep.subr.mxu1 %v881_v3  ;;  %v535_v39 = vld [vmem:[%s1419_s7 + $0x18] sm:$0xff] }
  0x42   :  { %224 = vmatmul.mubr.f32.vlgmr.msra.gmra.mxu0 %v46_v40  ;;  %384 = vmatpush1.msra.mxu1 %v317_v47  ;;  %v534_v40 = vld [vmem:[%s1419_s7 + $0x10] sm:$0xff] }
  0x43   :  { %229 = vmatprep.mubr.f32.mxu0 %v50_v41  ;;  %405 = vmatprep.subr.mxu1 %v881_v3  ;;  %v533_v41 = vld [vmem:[%s1419_s7 + $0x8] sm:$0xff] }
  0x44   :  { %406 = vmatpush2.msra.mxu1 %v338_v48  ;;  %807 = vmatprep.subr.mxu0 %v440_v54 }
  0x45   :  { %407 = vmatprep.subr.mxu1 %v881_v3  ;;  %808 = vmatpush3.msra.mxu0 %v440_v54 }
  0x46   :  { %230 = vmatmul.mubr.f32.gmra.mxu0 %v49_v42  ;;  %408 = vmatpush2.msra.mxu1 %v337_v49  ;;  %v532_v42 = vld [vmem:[%s1419_s7] sm:$0xff] }
  0x47   :  { %409 = vmatprep.subr.mxu1 %v881_v3  ;;  %809 = vmatprep.subr.mxu0 %v439_v18 }
  0x48   :  { %410 = vmatpush2.msra.mxu1 %v336_v50  ;;  %810 = vmatpush3.msra.mxu0 %v439_v18  ;;  %v635_v50 = vld [vmem:[%s1421_s9 + $0x10] sm:$0x3f] }
  0x49   :  { %411 = vmatprep.subr.mxu1 %v881_v3  ;;  %811 = vmatprep.subr.mxu0 %v438_v19 }
  0x4a   :  { %412 = vmatpush2.msra.mxu1 %v335_v51  ;;  %812 = vmatpush3.msra.mxu0 %v438_v19  ;;  %v634_v51 = vld [vmem:[%s1421_s9 + $0x8] sm:$0xff] }
  0x4b   :  { %413 = vmatprep.subr.mxu1 %v881_v3  ;;  %813 = vmatprep.subr.mxu0 %v437_v20 }
  0x4c   :  { %414 = vmatpush2.msra.mxu1 %v334_v52  ;;  %814 = vmatpush3.msra.mxu0 %v437_v20  ;;  %v633_v52 = vld [vmem:[%s1421_s9] sm:$0xff] }
  0x4d   :  { %415 = vmatprep.subr.mxu1 %v881_v3  ;;  %815 = vmatprep.subr.mxu0 %v436_v21 }
  0x4e   :  { %416 = vmatpush2.msra.mxu1 %v333_v53  ;;  %816 = vmatpush3.msra.mxu0 %v436_v21  ;;  %v771_v53 = vld [vmem:[%s1422_s8] ss:$0 sm:$0xff] }
  0x4f   :  { %817 = vmatprep.subr.mxu0 %v435_v22  ;;  %832 = vmatprep.subr.msk.mxu1 %vm552_vm3, %v537_v37 }
  0x50   :  { %818 = vmatpush3.msra.mxu0 %v435_v22 }
  0x51   :  { %819 = vmatprep.subr.mxu0 %v434_v23 }
  0x52   :  { %820 = vmatpush3.msra.mxu0 %v434_v23 }
  0x53   :  { %821 = vmatprep.subr.mxu0 %v433_v24 }
  0x54   :  { %822 = vmatpush3.msra.mxu0 %v433_v24 }
  0x55   :  { %823 = vmatprep.subr.mxu0 %v432_v25 }
  0x56   :  { %824 = vmatpush3.msra.mxu0 %v432_v25 }
  0x57   :  { %825 = vmatprep.subr.mxu0 %v431_v26 }
  0x58   :  { %826 = vmatpush3.msra.mxu0 %v431_v26 }
  0x59   :  { %827 = vmatprep.subr.mxu0 %v430_v27 }
  0x5a   :  { %828 = vmatpush3.msra.mxu0 %v430_v27 }
  0xe0   :  { %v302_v60 = vpop.f32.mrf.mxu1 }
  0xe2   :  { %v304_v3 = vpop.f32.mrf.mxu1 }
  0xe4   :  { %v308_v6 = vpop.f32.mrf.mxu1 }
  0xe6   :  { %v310_v12 = vpop.f32.mrf.mxu1 }
 0x102   :  { %v225_v63 = vpop.f32.mrf.mxu0 }
 0x103   :  { %v226_v0 = vadd.f32 %v225_v63, %v145_v61 }
 0x104   :  { %v227_v1 = vpop.f32.mrf.mxu0 }
 0x105   :  { %v228_v2 = vadd.f32 %v227_v1, %v149_v62  ;;  %v303_v4 = vadd.f32 %v302_v60, %v226_v0  ;;  %v18_v60 = vstv %s1423_s12 }
 0x106   :  { %v231_v5 = vpop.f32.mrf.mxu0  ;;  %19 = vst [vmem:[#allocation2] sm:$0x1] %v18_v60 }
 0x107   :  { %v305_v7 = vadd.f32 %v304_v3, %v228_v2  ;;  %v232_v8 = vadd.f32 %v231_v5, %v145_v61  ;;  %v775_v61 = vld [vmem:[%s1424_s10] ss:$0 sm:$0xff] }
 0x108   :  { %v233_v9 = vpop.f32.mrf.mxu0 }
 0x109   :  { %857 = vtanh.f32 %v305_v7  ;;  %v234_v10 = vadd.f32 %v233_v9, %v149_v62  ;;  %v309_v11 = vadd.f32 %v308_v6, %v232_v8 }
 0x10a   :  { %859 = vtanh.f32 %v303_v4  ;;  %v779_v4 = vld [vmem:[%s1425_s11] ss:$0 sm:$0xff] }
 0x10b   :  { %v311_v13 = vadd.f32 %v310_v12, %v234_v10 }
 0x10d   :  { %861 = vtanh.f32 %v311_v13  ;;  %v780_v9 = vld [vmem:[#allocation2] ss:$0 sm:$0xff] }
 0x10e   :  { %863 = vtanh.f32 %v309_v11 }
 0x116   :  { %v858_v14 = vpop.eup %857 }
 0x117   :  { %v860_v15 = vpop.eup %859  ;;  %766 = vmatprep.mubr.msk.f32.mxu1 %vm346_vm1, %v858_v14 }
 0x118   :  { %418 = vmatmul.mubr.f32.vlgmr.msra.gmra.mxu1 %v860_v15 }
 0x119   :  { %833 = vmatpush3.msk.msra.mxu1 %vm552_vm3, %v537_v37 }
 0x11a   :  { %v862_v16 = vpop.eup %861  ;;  %834 = vmatprep.subr.mxu1 %v536_v38 }
 0x11b   :  { %v864_v17 = vpop.eup %863  ;;  %767 = vmatprep.mubr.msk.f32.mxu1 %vm346_vm1, %v862_v16  ;;  %835 = vmatpush3.msra.mxu1 %v536_v38 }
 0x11c   :  { %423 = vmatmul.mubr.f32.gmra.mxu1 %v864_v17  ;;  %836 = vmatprep.subr.mxu1 %v535_v39 }
 0x11d   :  { %837 = vmatpush3.msra.mxu1 %v535_v39 }
 0x11e   :  { %838 = vmatprep.subr.mxu1 %v534_v40 }
 0x11f   :  { %839 = vmatpush3.msra.mxu1 %v534_v40 }
 0x120   :  { %840 = vmatprep.subr.mxu1 %v533_v41 }
 0x121   :  { %841 = vmatpush3.msra.mxu1 %v533_v41 }
 0x122   :  { %842 = vmatprep.subr.mxu1 %v532_v42 }
 0x123   :  { %843 = vmatpush3.msra.mxu1 %v532_v42 }
 0x124   :  { %847 = vmatprep.subr.msk.mxu1 %vm650_vm5, %v635_v50 }
 0x1d8   :  { %v419_v29 = vpop.f32.mrf.mxu1 }
 0x1d9   :  { %v420_v30 = vadd.f32 %v765_v28, %v419_v29 }
 0x1da   :  { %v421_v31 = vpop.f32.mrf.mxu1 }
 0x1db   :  { %865 = vtanh.f32 %v420_v30 }
 0x1dc   :  { %v424_v32 = vpop.f32.mrf.mxu1 }
 0x1dd   :  { %v425_v33 = vadd.f32 %v765_v28, %v424_v32 }
 0x1de   :  { %v426_v34 = vpop.f32.mrf.mxu1 }
 0x1df   :  { %867 = vtanh.f32 %v425_v33 }
 0x1e8   :  { %v866_v35 = vpop.eup %865 }
 0x1e9   :  { %829 = vmatprep.mubr.msk.f32.mxu0 %vm448_vm2, %v866_v35 }
 0x1ec   :  { %v868_v36 = vpop.eup %867 }
 0x1ed   :  { %830 = vmatmul.mubr.msk.f32.vlgmr.msra.gmra.mxu0 %vm448_vm2, %v868_v36 }
 0x2ad   :  { %v831_v44 = vpop.f32.mrf.mxu0 }
 0x2ae   :  { %v527_v45 = vadd.f32 %v831_v44, %v768_v43 }
 0x2af   :  { %v521_v46 = vpop.f32.mrf.mxu0 }
 0x2b0   :  { %v522_v47 = vadd.f32 %v768_v43, %v521_v46 }
 0x2b2   :  { %869 = vtanh.f32 %v522_v47 }
 0x2b3   :  { %871 = vtanh.f32 %v527_v45 }
 0x2bf   :  { %v870_v48 = vpop.eup %869 }
 0x2c0   :  { %v872_v49 = vpop.eup %871  ;;  %844 = vmatprep.mubr.msk.f32.mxu1 %vm545_vm4, %v870_v48 }
 0x2c1   :  { %845 = vmatmul.mubr.msk.f32.vlgmr.msra.gmra.mxu1 %vm545_vm4, %v872_v49 }
 0x2c2   :  { %848 = vmatpush3.msk.msra.mxu1 %vm650_vm5, %v635_v50 }
 0x2c3   :  { %849 = vmatprep.subr.mxu1 %v634_v51 }
 0x2c4   :  { %850 = vmatpush3.msra.mxu1 %v634_v51 }
 0x2c5   :  { %851 = vmatprep.subr.mxu1 %v633_v52 }
 0x2c6   :  { %852 = vmatpush3.msra.mxu1 %v633_v52 }
 0x381   :  { %v846_v54 = vpop.f32.mrf.mxu1 }
 0x382   :  { %v628_v55 = vadd.f32 %v846_v54, %v771_v53 }
 0x383   :  { %v622_v56 = vpop.f32.mrf.mxu1 }
 0x384   :  { %v623_v57 = vadd.f32 %v771_v53, %v622_v56 }
 0x386   :  { %873 = vtanh.f32 %v623_v57 }
 0x387   :  { %875 = vtanh.f32 %v628_v55 }
 0x393   :  { %v874_v58 = vpop.eup %873 }
 0x394   :  { %v876_v59 = vpop.eup %875  ;;  %853 = vmatprep.mubr.msk.f32.mxu1 %vm643_vm6, %v874_v58 }
 0x395   :  { %854 = vmatmul.mubr.msk.f32.vlgmr.msra.gmra.mxu1 %vm643_vm6, %v876_v59 }
 0x455   :  { %v855_v62 = vpop.f32.mrf.mxu1 }
 0x456   :  { %v726_v63 = vadd.f32 %v855_v62, %v775_v61 }
 0x457   :  { %v720_v3 = vpop.f32.mrf.mxu1 }
 0x458   :  { %v721_v0 = vadd.f32 %v775_v61, %v720_v3  ;;  %877 = vtanh.f32 %v726_v63 }
 0x45a   :  { %879 = vtanh.f32 %v721_v0 }
 0x465   :  { %v878_v1 = vpop.eup %877 }
 0x466   :  { %v739_v7 = vmul.f32 %v878_v1, %v779_v4 }
 0x467   :  { %v880_v2 = vpop.eup %879 }
 0x468   :  { %v738_v5 = vmul.f32 %v880_v2, %v779_v4  ;;  %v744_v8 = vsel %vm740_vm7, %v739_v7, 0.0 }
 0x46a   :  { %v741_v6 = vsel %vm740_vm7, %v738_v5, 0.0 }
 0x46b   :  { %742 = vadd.xlane.f32.xlu0 %v741_v6 }
 0x46f   :  { %745 = vadd.xlane.f32.xlu0 %v744_v8 }
 0x4f4   :  { %v743_v10 = vpop.xlane.xlu0 %742 }
 0x4f5   :  { %v754_v11 = vadd.f32 %v780_v9, %v743_v10 }
 0x4f7   :  { %757 = vst.msk [vmem:[%s1426_s13] sm:$0xff] %vm756_vm8, %v754_v11 }
 0x4f8   :  { %v746_v12 = vpop.xlane.xlu0 %745 }
 0x4f9   :  { %v755_v13 = vadd.f32 %v780_v9, %v746_v12 }
 0x4fb   :  { %758 = vst.msk [vmem:[%s1426_s13 + $0x8] sm:$0xff] %vm756_vm8, %v755_v13 }

</bundles_post_ra>
